<compile_context>
chip_gen: v7x
topology: tpu7x:2x2x1
jax: 0.10.0
libtpu: 0.0.40
codegen_flags: <defaults>
</compile_context>

<pallas_src>
import jax
import jax.numpy as jnp
from jax.experimental import pallas as pl
from jax.experimental.pallas import tpu as pltpu


def _deconv_bn_relu_kernel(w_ref, x_ref, scale_ref, bias_ref, o_ref):
    # MXU matmul with fused (folded-BN affine + ReLU) epilogue.
    acc = jnp.dot(w_ref[...], x_ref[...], preferred_element_type=jnp.float32)
    y = acc * scale_ref[...] + bias_ref[...]
    o_ref[...] = jnp.maximum(y, 0.0).astype(o_ref.dtype)


def _pick_tiles(Nt: int, K: int, L: int):
    """Choose (sublane tile over 4*Cout, lane tile over H*W)."""
    def _divisor_opts(dim, cands):
        opts = [c for c in cands if c <= dim and dim % c == 0]
        return opts or [dim]  # full extent is always a legal block dim

    tl_opts = _divisor_opts(L, (2048, 1024, 512, 256, 128))
    tnt_opts = _divisor_opts(Nt, (1024, 512, 256, 128, 64, 32, 16, 8))

    budget = 12 * 1024 * 1024  # double-buffered working set target
    for tl in tl_opts:           # prefer the widest lane tile (streaming stores)
        for tnt in tnt_opts:     # then the biggest sublane tile that fits
            blk = 4 * (tnt * K + K * tl + tnt * tl + 2 * tnt)
            if 2 * blk <= budget:
                return tnt, tl
    return tnt_opts[-1], tl_opts[-1]


def trans_basic_conv2d(x, weight, gamma, beta, running_mean, running_var, eps=1e-5):
    """Forward of TransBasicConv2d.

    x:      (N, Cin, H, W)    NCHW, same convention as PyTorch
    weight: (Cin, Cout, 2, 2) ConvTranspose2d weight layout
    BN params: (Cout,) each.
    """
    # TODO(synk): BatchNorm2d is folded in inference mode (running stats);
    # training-mode batch statistics are not computed inside the kernel.
    N, Cin, H, W = x.shape
    Cin_w, Cout, kH, kW = weight.shape
    assert Cin_w == Cin and kH == 2 and kW == 2, (
        "only kernel_size=2, stride=2, padding=0 (module defaults) supported")

    f32 = jnp.float32
    K = Cin
    Nt = kH * kW * Cout          # rows of the weight matrix: (co, kh, kw)
    L = H * W                    # lane axis: spatial positions

    # Compute dtype: keep bf16/f32 inputs native (MXU handles both), accumulate f32.
    cdt = x.dtype if x.dtype in (jnp.bfloat16, jnp.float32) else f32

    # RHS (big operand): exactly the NCHW memory layout, no transpose needed.
    xr = x.reshape(N, Cin, L)
    if xr.dtype != cdt:
        xr = xr.astype(cdt)

    # LHS (weights): row index = co*4 + kh*2 + kw, contraction dim (Cin) last.
    wmat = jnp.transpose(weight, (1, 2, 3, 0)).reshape(Nt, Cin).astype(cdt)

    # Fold BatchNorm into per-row scale/bias (each co repeated over kh,kw).
    scale_c = gamma.astype(f32) / jnp.sqrt(running_var.astype(f32) + eps)
    bias_c = beta.astype(f32) - running_mean.astype(f32) * scale_c
    scale = jnp.repeat(scale_c, kH * kW).reshape(Nt, 1)
    bias = jnp.repeat(bias_c, kH * kW).reshape(Nt, 1)

    tnt, tl = _pick_tiles(Nt, K, L)
    grid = (N, Nt // tnt, L // tl)

    blk_bytes = 4 * (tnt * K + K * tl + tnt * tl + 2 * tnt)
    # Above v5e's 16 MiB scoped default, within v7x's 64 MiB physical VMEM.
    vmem_limit = int(min(64 * 1024 * 1024, max(32 * 1024 * 1024, 4 * blk_bytes)))

    out2 = pl.pallas_call(
        _deconv_bn_relu_kernel,
        out_shape=jax.ShapeDtypeStruct((N, Nt, L), x.dtype),
        grid_spec=pltpu.PrefetchScalarGridSpec(
            num_scalar_prefetch=0,
            grid=grid,
            in_specs=[
                pl.BlockSpec((tnt, K), lambda n, j, l: (j, 0)),               # weights
                pl.BlockSpec((pl.Squeezed(), K, tl), lambda n, j, l: (n, 0, l)),  # x slab
                pl.BlockSpec((tnt, 1), lambda n, j, l: (j, 0)),               # BN scale
                pl.BlockSpec((tnt, 1), lambda n, j, l: (j, 0)),               # BN bias
            ],
            out_specs=pl.BlockSpec((pl.Squeezed(), tnt, tl),
                                   lambda n, j, l: (n, j, l)),
        ),
        compiler_params=pltpu.CompilerParams(
            dimension_semantics=("parallel", "parallel", "parallel"),
            vmem_limit_bytes=vmem_limit,
        ),
    )(wmat, xr, scale, bias)

    # (N, Cout*2*2, H*W) -> (N, Cout, kh, kw, H, W) -> (N, Cout, H, kh, W, kw)
    # -> (N, Cout, 2H, 2W).  Pure layout plumbing, one XLA transpose.
    r = out2.reshape(N, Cout, kH, kW, H, W)
    y = jnp.transpose(r, (0, 1, 4, 2, 5, 3)).reshape(N, Cout, H * kH, W * kW)
    return y


if __name__ == "__main__":
    key = jax.random.PRNGKey(0)
    k1, k2, k3, k4, k5, k6 = jax.random.split(key, 6)

    N, Cin, H, W = 2, 4, 16, 16
    Cout = 8
    eps = 1e-5

    x = jax.random.normal(k1, (N, Cin, H, W), dtype=jnp.float32)
    weight = jax.random.normal(k2, (Cin, Cout, 2, 2), dtype=jnp.float32) * 0.1
    gamma = jax.random.uniform(k3, (Cout,), dtype=jnp.float32, minval=0.5, maxval=1.5)
    beta = jax.random.normal(k4, (Cout,), dtype=jnp.float32) * 0.1
    running_mean = jax.random.normal(k5, (Cout,), dtype=jnp.float32) * 0.1
    running_var = jax.random.uniform(k6, (Cout,), dtype=jnp.float32, minval=0.5, maxval=1.5)

    y = trans_basic_conv2d(x, weight, gamma, beta, running_mean, running_var, eps)
    y = jax.block_until_ready(y)

    # Pure-JAX reference: ConvTranspose2d(k=2, s=2, p=0) + BN(inference) + ReLU.
    r = jnp.einsum("nchw,cokl->nhwklo", x, weight)
    y_ref = jnp.transpose(r, (0, 5, 1, 3, 2, 4)).reshape(N, Cout, 2 * H, 2 * W)
    s = gamma / jnp.sqrt(running_var + eps)
    bvec = beta - running_mean * s
    y_ref = jnp.maximum(y_ref * s[None, :, None, None] + bvec[None, :, None, None], 0.0)

    assert y.shape == (N, Cout, 2 * H, 2 * W) and y.dtype == x.dtype
    assert jnp.allclose(y, y_ref, atol=1e-4, rtol=1e-4), "mismatch vs reference"

    print("KERNEL_OK")
</pallas_src>

<mosaic_0001>
module attributes {stable_mosaic.version = 11 : i64} {
  func.func @_deconv_bn_relu_kernel(%arg0: i32, %arg1: i32, %arg2: i32, %arg3: memref<32x4xf32, #tpu.memory_space<vmem>>, %arg4: memref<1x4x256xf32, #tpu.memory_space<vmem>>, %arg5: memref<32x1xf32, #tpu.memory_space<vmem>>, %arg6: memref<32x1xf32, #tpu.memory_space<vmem>>, %arg7: memref<1x32x256xf32, #tpu.memory_space<vmem>>) attributes {dimension_semantics = [#tpu.dimension_semantics<parallel>, #tpu.dimension_semantics<parallel>, #tpu.dimension_semantics<parallel>], iteration_bounds = array<i64: 2, 1, 1>, scalar_prefetch = 0 : i64, scratch_operands = 0 : i64, tpu.core_type = #tpu.core_type<tc>, window_params = [{transform_indices = @transform_0, window_bounds = array<i64: 32, 4>}, {transform_indices = @transform_1, window_bounds = array<i64: 1, 4, 256>}, {transform_indices = @transform_2, window_bounds = array<i64: 32, 1>}, {transform_indices = @transform_3, window_bounds = array<i64: 32, 1>}, {transform_indices = @transform_4, window_bounds = array<i64: 1, 32, 256>}]} {
    %c0 = arith.constant 0 : index
    %c0_0 = arith.constant 0 : index
    %0 = vector.load %arg3[%c0, %c0_0] : memref<32x4xf32, #tpu.memory_space<vmem>>, vector<32x4xf32>
    %c0_1 = arith.constant 0 : index
    %c0_2 = arith.constant 0 : index
    %c0_3 = arith.constant 0 : index
    %1 = vector.load %arg4[%c0_1, %c0_2, %c0_3] : memref<1x4x256xf32, #tpu.memory_space<vmem>>, vector<1x4x256xf32>
    %2 = vector.shape_cast %1 : vector<1x4x256xf32> to vector<4x256xf32>
    %cst = arith.constant dense<0.000000e+00> : vector<32x256xf32>
    %3 = tpu.matmul %0, %2, %cst {dimension_numbers = #tpu.dot_dimension_numbers<[1], [0], [0], [1], [0, 0, 1, 1], [], []>} : vector<32x4xf32>, vector<4x256xf32>, vector<32x256xf32> -> vector<32x256xf32>
    %c0_4 = arith.constant 0 : index
    %c0_5 = arith.constant 0 : index
    %4 = vector.load %arg5[%c0_4, %c0_5] : memref<32x1xf32, #tpu.memory_space<vmem>>, vector<32x1xf32>
    %5 = vector.broadcast %4 : vector<32x1xf32> to vector<32x256xf32>
    %6 = arith.mulf %3, %5 : vector<32x256xf32>
    %c0_6 = arith.constant 0 : index
    %c0_7 = arith.constant 0 : index
    %7 = vector.load %arg6[%c0_6, %c0_7] : memref<32x1xf32, #tpu.memory_space<vmem>>, vector<32x1xf32>
    %8 = vector.broadcast %7 : vector<32x1xf32> to vector<32x256xf32>
    %9 = arith.addf %6, %8 : vector<32x256xf32>
    %cst_8 = arith.constant 0.000000e+00 : f32
    %10 = vector.broadcast %cst_8 : f32 to vector<32x256xf32>
    %11 = arith.maximumf %9, %10 : vector<32x256xf32>
    %c0_9 = arith.constant 0 : index
    %c0_10 = arith.constant 0 : index
    %c0_11 = arith.constant 0 : index
    %12 = vector.load %arg7[%c0_9, %c0_10, %c0_11] : memref<1x32x256xf32, #tpu.memory_space<vmem>>, vector<1x32x256xf32>
    %13 = vector.shape_cast %12 : vector<1x32x256xf32> to vector<32x256xf32>
    %14 = vector.shape_cast %11 : vector<32x256xf32> to vector<1x32x256xf32>
    tpu.vector_store %arg7[%c0_9, %c0_10, %c0_11], %14 {strides = array<i32>} : memref<1x32x256xf32, #tpu.memory_space<vmem>>, vector<1x32x256xf32>,
    return
  }
  func.func @transform_0(%arg0: i32, %arg1: i32, %arg2: i32) -> (i32, i32) {
    %c0_i32 = arith.constant 0 : i32
    %c0_i32_0 = arith.constant 0 : i32
    return %arg1, %c0_i32 : i32, i32
  }
  func.func @transform_1(%arg0: i32, %arg1: i32, %arg2: i32) -> (i32, i32, i32) {
    %c0_i32 = arith.constant 0 : i32
    %c0_i32_0 = arith.constant 0 : i32
    return %arg0, %c0_i32, %arg2 : i32, i32, i32
  }
  func.func @transform_2(%arg0: i32, %arg1: i32, %arg2: i32) -> (i32, i32) {
    %c0_i32 = arith.constant 0 : i32
    %c0_i32_0 = arith.constant 0 : i32
    return %arg1, %c0_i32 : i32, i32
  }
  func.func @transform_3(%arg0: i32, %arg1: i32, %arg2: i32) -> (i32, i32) {
    %c0_i32 = arith.constant 0 : i32
    %c0_i32_0 = arith.constant 0 : i32
    return %arg1, %c0_i32 : i32, i32
  }
  func.func @transform_4(%arg0: i32, %arg1: i32, %arg2: i32) -> (i32, i32, i32) {
    %c0_i32 = arith.constant 0 : i32
    return %arg0, %arg1, %arg2 : i32, i32, i32
  }
}

</mosaic_0001>

<bundles_post_ra>
// kernel: tpu_custom_call.1
= control target key start
LH: loop header
LB: loop body
LE: loop exit
PB: predicated region body
PF: predicated region fallthrough
CT: control target
= control target key end

     0   :  { %9 = vsyncpa [#allocation3], 0  ;;  %s1002_s0 = inlined_call_operand.vmem [shape: f32[32,4], index: 0, kind: input, shape index: {}]   ;;  %s1003_s1 = inlined_call_operand.vmem [shape: f32[2,4,256], index: 1, kind: input, shape index: {}]   ;;  %s1004_s2 = inlined_call_operand.vmem [shape: f32[32,1], index: 2, kind: input, shape index: {}]   ;;  %s1005_s3 = inlined_call_operand.vmem [shape: f32[32,1], index: 3, kind: input, shape index: {}]   ;;  %s1006_s4 = inlined_call_operand.hbm [shape: f32[2,32,256], index: 4, kind: output, shape index: {}]  }
   0x1   :  { %11 = vsyncpa [#allocation3 + $0x1], 0  ;;  %s843_s15 = smov 0   ;;  %s845_s16 = smov 0  }
   0x2   :  { %s847_s17 = smov 0   ;;  %s849_s18 = smov 0  }
   0x3   :  { %s851_s19 = smov 0   ;;  %s853_s20 = smov 0  }
   0x4 LB: > { %s645_s21 = sadd.s32 4294967295, %s811_s20   ;;  %s646_s22 = sadd.s32 4294967294, %s811_s20   ;;  %s811_s20 = sphi %s853_s20, %s17_s20   ;;  %s807_s19 = sphi %s851_s19, %s1013_s19   ;;  %s803_s18 = sphi %s849_s18, %s1012_s18   ;;  %s799_s17 = sphi %s847_s17, %s1011_s17   ;;  %s795_s16 = sphi %s845_s16, %s1010_s16   ;;  %s791_s15 = sphi %s843_s15, %s1009_s15  }
   0x5   : > { %s36_s23 = sadd.s32 1, %s807_s19  ;;  %s153_s24 = sadd.s32 1, %s799_s17 }
   0x6   : > { %p38_p0 = scmp.ge.s32.totalorder %s36_s23, 2  ;;  %p163_p1 = scmp.ne.s32.totalorder %s799_s17, %s795_s16 }
   0x7   : > { %p164_p2 = scmp.eq.s32.totalorder %s645_s21, 1  ;;  %p169_p3 = scmp.ne.s32.totalorder %s795_s16, %s791_s15 }
   0x8   : > { %s1015_s23 = smov (%p38_p0, %s36_s23), 0  ;;  %p170_p5 = scmp.eq.s32.totalorder %s646_s22, 1 }
   0x9   : > { %p883_p4 = por %p164_p2, %p163_p1  ;;  %s146_s26 = ssub.s32 %s807_s19, %s1015_s23 }
   0xa   : > { %p652_p6 = scmp.ge.s32.totalorder %s811_s20, 1  ;;  %p151_p7 = scmp.eq.s32.totalorder %s146_s26, 0 }
   0xb   : > { %p890_p8 = por %p170_p5, %p169_p3  ;;  %p228_p9 = scmp.lt.s32.totalorder %s811_s20, 3 }
   0xc   : > { %s896_s28 = scalar_select %p151_p7, %s799_s17, %s153_s24  }
   0xd   : > { %p229_p10 = pnand %p652_p6, %p228_p9 }
   0xe   : > { %p280_p11 = scmp.lt.s32.totalorder (!%p229_p10), %s803_s18, 1  ;;  %v813_v0 = vmov (!%p229_p10), 0.0   ;;  %v419_v1 = vld [vmem:[%s1004_s2 + $0x10] sm:$0xff] (!%p229_p10)  ;;  %v814_v2 = vmov (!%p229_p10), 0   ;;  %v417_v3 = vld [vmem:[%s1004_s2] sm:$0xff] (!%p229_p10)  ;;  %v420_v4 = vld [vmem:[%s1004_s2 + $0x18] sm:$0xff] (!%p229_p10) }
   0xf   : > { %232 = sbr.rel (%p229_p10) target bundleno = 269 (0x10d), region = 36  ;;  %392 = vmatprep.mubr.f32.mxu0 (!%p229_p10), %v813_v0  ;;  %404 = vmatprep.mubr.f32.mxu1 (!%p229_p10), %v813_v0  ;;  %v418_v5 = vld [vmem:[%s1004_s2 + $0x8] sm:$0xff] (!%p229_p10)  ;;  %vm323_vm0 = vcmask (!%p229_p10), 1043456   ;;  %v303_v8 = vld [vmem:[%s1002_s0] sm:$0xff] (!%p229_p10)  ;;  %vm310_vm1 = vcmask (!%p229_p10), 31744   ;;  %v305_v9 = vld [vmem:[%s1002_s0 + $0x10] sm:$0xff] (!%p229_p10) }
  0x10   : > { %731 = vset.pattern.permute.xlu1 (!%p229_p10), %v814_v2  ;;  %730 = vset.pattern.permute.xlu0 (!%p229_p10), %v814_v2  ;;  %v450_v10 = vld [vmem:[%s1005_s3 + $0x8] sm:$0xff] (!%p229_p10)  ;;  %v449_v11 = vld [vmem:[%s1005_s3] sm:$0xff] (!%p229_p10)  ;;  %v306_v13 = vld [vmem:[%s1002_s0 + $0x18] sm:$0xff] (!%p229_p10)  ;;  %s270_s22 = sand.u32 (!%p229_p10), 1, %s795_s16   ;;  %s668_s26 = sshll.u32 (!%p229_p10), %s803_s18, 10 }
  0x11   : > { %433 = vperm.xlu1 (!%p229_p10), %731, %v419_v1   ;;  %423 = vperm.xlu0 (!%p229_p10), %730, %v417_v3   ;;  %v304_v12 = vld [vmem:[%s1002_s0 + $0x8] sm:$0xff] (!%p229_p10)  ;;  %v452_v14 = vld [vmem:[%s1005_s3 + $0x18] sm:$0xff] (!%p229_p10)  ;;  %v451_v15 = vld [vmem:[%s1005_s3 + $0x10] sm:$0xff] (!%p229_p10)  ;;  %s653_s24 = sshll.u32 (!%p229_p10), %s270_s22, 6  ;;  %s950_s7 = scalar_lea.hbm (!%p229_p10), %s1006_s4, %s668_s26 }
  0x12   : > { %s272_s29 = scalar_lea.vmem (!%p229_p10), [#allocation2], %s653_s24  ;;  %s815_s9 = smov (!%p229_p10), [#allocation2]  }
  0x13   : > { %s516_s30 = sshll.u32 (!%p229_p10), %s272_s29, 4  ;;  %s737_s10 = sshll.u32 (!%p229_p10), %s815_s9, 4  ;;  %s952_s30 = int_to_ptr.vmem [resolvable:$true] %s516_s30  ;;  %s738_s10 = int_to_ptr.vmem [resolvable:$false] %s737_s10 }
  0x14   : > { %s739_s11 = scalar_lea.vmem (!%p229_p10), %s738_s10, 2048  ;;  %p740_p1 = scmp.lt.s32.totalorder (!%p229_p10), %s952_s30, %s738_s10 }
  0x15   : > { %438 = vperm.xlu1 (!%p229_p10), %731, %v420_v4   ;;  %428 = vperm.xlu0 (!%p229_p10), %730, %v418_v5  }
  0x16   : > { %s281_s5 = scalar_select %p280_p11, %s803_s18, 1 }
  0x17   : > { %s956_s18 = scalar_lea.sflag [#allocation3], %s270_s22 }
  0x18   : > { %s667_s8 = sshll.u32 %s281_s5, 3 }
  0x19   : > { %s287_s21 = scalar_lea.vmem %s1003_s1, %s667_s8  ;;  %460 = vperm.xlu1 %731, %v450_v10   ;;  %455 = vperm.xlu0 %730, %v449_v11   ;;  %s733_s8 = scalar_lea.vmem %s952_s30, 1024 }
  0x1a   : > { %v307_v6 = vld [vmem:[%s287_s21] sm:$0xff]  ;;  %p734_p12 = scmp.ne.s32.totalorder %s952_s30, %s733_s8  ;;  %p741_p2 = scmp.lt.s32.totalorder %s739_s11, %s733_s8 }
  0x1b   : > { %v309_v7 = vcombine.high %v307_v6, %v307_v6 }
  0x1c   : > { %p735_p13 = pnand %p734_p12, %p883_p4  ;;  %p742_p3 = por %p741_p2, %p740_p1 }
  0x1d   : > { %656 = vmatprep.subr.msk.mxu0 %vm323_vm0, %v309_v7  ;;  %669 = vmatprep.subr.msk.mxu1 %vm323_vm0, %v309_v7 }
  0x1e   : > { %657 = vmatpush1.msk.msra.mxu0 %vm323_vm0, %v307_v6  ;;  %670 = vmatpush1.msk.msra.mxu1 %vm323_vm0, %v307_v6  ;;  %p736_p0 = pneg %p735_p13 }
  0x1f   : > { %658 = vmatmul.mubr.msk.f32.vlgmr.msra.gmra.mrb[0].mxu0 %vm310_vm1, %v303_v8  ;;  %660 = vmatmul.mubr.msk.f32.vlgmr.msra.gmra.mrb[0].mxu1 %vm310_vm1, %v305_v9 }
  0x20   : > { %398 = vmatprep.mubr.f32.mxu0 %v813_v0  ;;  %410 = vmatprep.mubr.f32.mxu1 %v813_v0  ;;  %p743_p5 = pnand %p742_p3, %p736_p0 }
  0x21   : > { %470 = vperm.xlu1 %731, %v452_v14   ;;  %465 = vperm.xlu0 %730, %v451_v15  }
  0x23   : > { %659 = vmatmul.mubr.msk.f32.gmra.mrb[2].mxu0 %vm310_vm1, %v304_v12  ;;  %661 = vmatmul.mubr.msk.f32.gmra.mrb[2].mxu1 %vm310_vm1, %v306_v13 }
  0x90   : > { %v424_v16 = vpop.permute.xlu0 %423  ;;  %v434_v17 = vpop.permute.xlu1 %433 }
  0x94   : > { %v429_v18 = vpop.permute.xlu0 %428  ;;  %v439_v19 = vpop.permute.xlu1 %438 }
  0x98   : > { %v456_v20 = vpop.permute.xlu0 %455  ;;  %v461_v21 = vpop.permute.xlu1 %460 }
  0xa0   : > { %v466_v28 = vpop.permute.xlu0 %465  ;;  %v471_v43 = vpop.permute.xlu1 %470 }
  0xf2   : > { %v394_v22 = vpop.f32.mrb[0].mxu0  ;;  %v406_v23 = vpop.f32.mrb[0].mxu1 }
  0xf3   : > { %v441_v24 = vmul.f32 %v424_v16, %v394_v22  ;;  %v445_v25 = vmul.f32 %v434_v17, %v406_v23  ;;  %v396_v26 = vpop.f32.mrb[1].mxu0  ;;  %v408_v27 = vpop.f32.mrb[1].mxu1 }
  0xf4   : > { %v442_v29 = vmul.f32 %v424_v16, %v396_v26  ;;  %v446_v30 = vmul.f32 %v434_v17, %v408_v27 }
  0xf5   : > { %v473_v31 = vadd.f32 %v456_v20, %v441_v24  ;;  %v477_v32 = vadd.f32 %v466_v28, %v445_v25 }
  0xf6   : > { %v474_v33 = vadd.f32 %v456_v20, %v442_v29  ;;  %v478_v34 = vadd.f32 %v466_v28, %v446_v30  ;;  %v400_v35 = vpop.f32.mrb[2].mxu0  ;;  %v412_v36 = vpop.f32.mrb[2].mxu1 }
  0xf7   : > { %v481_v37 = vmax.f32 %v473_v31, 0.0  ;;  %v485_v38 = vmax.f32 %v477_v32, 0.0  ;;  %v443_v39 = vmul.f32 %v429_v18, %v400_v35  ;;  %v447_v40 = vmul.f32 %v439_v19, %v412_v36  ;;  %v402_v41 = vpop.f32.mrb[3].mxu0  ;;  %v414_v42 = vpop.f32.mrb[3].mxu1 }
  0xf8   : > { %v482_v44 = vmax.f32 %v474_v33, 0.0  ;;  %v486_v45 = vmax.f32 %v478_v34, 0.0  ;;  %v444_v46 = vmul.f32 %v429_v18, %v402_v41  ;;  %v448_v47 = vmul.f32 %v439_v19, %v414_v42 }
  0xf9   : > { %489 = vst [vmem:[%s272_s29] sm:$0xff] %v481_v37  ;;  %493 = vst [vmem:[%s272_s29 + $0x20] sm:$0xff] %v485_v38  ;;  %v475_v48 = vadd.f32 %v461_v21, %v443_v39  ;;  %v479_v49 = vadd.f32 %v471_v43, %v447_v40 }
  0xfa   : > { %490 = vst [vmem:[%s272_s29 + $0x8] sm:$0xff] %v482_v44  ;;  %494 = vst [vmem:[%s272_s29 + $0x28] sm:$0xff] %v486_v45  ;;  %v476_v50 = vadd.f32 %v461_v21, %v444_v46  ;;  %v480_v51 = vadd.f32 %v471_v43, %v448_v47 }
  0xfb   : > { %v483_v52 = vmax.f32 %v475_v48, 0.0  ;;  %v487_v53 = vmax.f32 %v479_v49, 0.0 }
  0xfc   : > { %v484_v54 = vmax.f32 %v476_v50, 0.0  ;;  %v488_v55 = vmax.f32 %v480_v51, 0.0 }
  0xfd   : > { %491 = vst [vmem:[%s272_s29 + $0x10] sm:$0xff] %v483_v52  ;;  %495 = vst [vmem:[%s272_s29 + $0x30] sm:$0xff] %v487_v53 }
  0xfe   : > { %492 = vst [vmem:[%s272_s29 + $0x18] sm:$0xff] %v484_v54  ;;  %496 = vst [vmem:[%s272_s29 + $0x38] sm:$0xff] %v488_v55 }
  0xff   : > { %746 = shalt.err (!%p743_p5)
}
 0x100   : > { %s747_s12 = scalar_lea.hbm %s950_s7, 1024  ;;  %s751_s21 = scalar_lea.hbm %s1006_s4, 2048 }
 0x101   : > { %p748_p6 = scmp.ne.s32.totalorder %s950_s7, %s747_s12  ;;  %p752_p10 = scmp.lt.u32.totalorder %s950_s7, %s1006_s4 }
 0x102   : > { %p753_p11 = scmp.lt.u32.totalorder %s751_s21, %s747_s12  ;;  %p755_p13 = scmp.lt.u32.totalorder %s747_s12, %s950_s7 }
 0x103   : > { %p749_p7 = pnand %p748_p6, %p883_p4 }
 0x104   : > { %p754_p12 = por %p753_p11, %p752_p10 }
 0x105   : > { %p750_p9 = pneg %p749_p7 }
 0x106   : > { %p756_p0 = por %p755_p13, %p754_p12 }
 0x108   : > { %p757_p1 = pnand %p756_p0, %p750_p9 }
 0x10a   : > { %760 = shalt.err (!%p757_p1)
}
 0x10b   : > { %s816_s26 = smov 256   ;;  %s817_s29 = smov 16  }
 0x10c   : > { %671 = dma.vmem_to_hbm [thread:$0]  (%p883_p4), %s952_s30, 1024, %s950_s7, %s956_s18, %s816_s26, %s816_s26, %s817_s29  }
 0x10d PF: > { %p677_p2 = scmp.ge.s32.totalorder %s811_s20, 2  ;;  %s531_s5 = sand.u32 1, %s791_s15  }
 0x10e   : > { %s532_s6 = scalar_lea.sflag [#allocation3], %s531_s5 }
 0x10f   : > { %p674_p3 = pnand %p677_p2, %p890_p8 }
 0x111   : > { %786 = dma.done.wait (!%p674_p3), %s532_s6, 1024  }
 0x112   : > { %788 = vsyncadd (!%p674_p3), %s532_s6, 4294966272  ;;  %s17_s20 = sadd.s32 1, %s811_s20   ;;  %s1009_s15 = smov %s795_s16 }
 0x113   : > { %p14_p5 = scmp.ge.s32.totalorder %s17_s20, 4   ;;  %s1010_s16 = smov %s799_s17 }
 0x114   : > { %s1011_s17 = smov %s896_s28  ;;  %s1012_s18 = smov %s807_s19 }
 0x115   : > { %s1013_s19 = smov %s1015_s23  ;;  %16 = sbr.rel (!%p14_p5) target bundleno = 4 (0x4), region = 80 }
 0x11c   :  { %537 = vsyncpa [#allocation3], 1 }
 0x11d   :  { %539 = vsyncpa [#allocation3 + $0x1], 1 }

</bundles_post_ra>
